<compile_context>
chip_gen: v7x
topology: tpu7x:2x2x1
jax: 0.10.0
libtpu: 0.0.40
codegen_flags: <defaults>
</compile_context>

<pallas_src>
import math

import jax
import jax.numpy as jnp
from jax.experimental import pallas as pl
from jax.experimental.pallas import tpu as pltpu

HIDDEN = 64  # fc1 output features


def value_kernel(x_ref, w1_ref, b1_ref, w2_ref, b2_ref, out_ref):
    # fc1 on the MXU with f32 accumulation: (tile_b, S) @ (S, 64) -> (tile_b, 64).
    h = jnp.dot(x_ref[...], w1_ref[...], preferred_element_type=jnp.float32)
    h = jnp.maximum(h + b1_ref[...], 0.0)
    # fc2 (64 -> 1) as a VPU multiply + XLU lane-reduce: no padded MXU matmul and
    # no (tile_b, 128) intermediate; the product is promoted to f32.
    out = jnp.sum(h * w2_ref[...], axis=-1, keepdims=True) + b2_ref[...]
    out_ref[...] = out.astype(out_ref.dtype)


def _round_up(n, m):
    return ((n + m - 1) // m) * m


def value_forward(x, params, *, tile_b=1024, compute_dtype=jnp.float32):
    """Pallas forward pass. Returns squeeze(relu(x@W1+b1) @ W2 + b2), shape (B,)."""
    w1, b1, w2, b2 = params
    B, state_dim = x.shape
    assert w1.shape == (state_dim, HIDDEN)

    # Hoist dtype casts out of the kernel. Weights are VMEM-resident, so casting
    # them here removes per-grid-step VPU casts; casting x also halves its HBM
    # read for bf16 (note: bf16 x reduces fc1 precision for large state_dim).
    if x.dtype != compute_dtype:
        x = x.astype(compute_dtype)
    w1 = w1.astype(compute_dtype)
    w2_row = w2.reshape(1, HIDDEN).astype(compute_dtype)
    b1_row = b1.reshape(1, HIDDEN).astype(jnp.float32)   # bias adds stay in f32
    b2_s = b2.reshape(1, 1).astype(jnp.float32)

    # Batch tiling: a single full block for small batches, otherwise a sublane-
    # friendly tile. No wrapper-side padding: the last (partial) block is handled
    # by Pallas masking — out-of-bounds rows compute garbage but are per-row and
    # never committed to HBM.
    if B <= tile_b:
        tile_b = B
    else:
        tile_b = _round_up(tile_b, 128)
    grid = (pl.cdiv(B, tile_b),)

    elem = jnp.dtype(compute_dtype).itemsize
    weight_bytes = (w1.size + w2_row.size) * elem + (b1_row.size + b2_s.size) * 4
    cost = pl.CostEstimate(
        flops=2 * B * (state_dim * HIDDEN + HIDDEN),
        bytes_accessed=B * state_dim * elem + B * 4 + weight_bytes,
        transcendentals=0,
    )

    out = pl.pallas_call(
        value_kernel,
        out_shape=jax.ShapeDtypeStruct((B, 1), jnp.float32),
        grid=grid,
        in_specs=[
            # x: streamed per batch tile (double-buffered by the pipeline).
            pl.BlockSpec((tile_b, state_dim), lambda i: (i, 0)),
            # weights / biases: constant block index -> fetched once, VMEM-resident.
            pl.BlockSpec((state_dim, HIDDEN), lambda i: (0, 0)),
            pl.BlockSpec((1, HIDDEN), lambda i: (0, 0)),
            pl.BlockSpec((1, HIDDEN), lambda i: (0, 0)),
            pl.BlockSpec((1, 1), lambda i: (0, 0)),
        ],
        out_specs=pl.BlockSpec((tile_b, 1), lambda i: (i, 0)),
        compiler_params=pltpu.CompilerParams(
            dimension_semantics=("parallel",),        # batch tiles are independent
            vmem_limit_bytes=32 * 1024 * 1024,        # explicit; footprint is tiny
        ),
        cost_estimate=cost,
    )(x, w1, b1_row, w2_row, b2_s)

    # (B, 1) -> (B,) ; (1, 1) -> scalar, matching torch's .squeeze().
    return jnp.squeeze(out)


def xavier_uniform(key, fan_in, fan_out):
    # Matches nn.init.xavier_uniform_ for a (fan_out, fan_in) PyTorch weight;
    # we return the transposed layout (fan_in, fan_out).
    bound = math.sqrt(6.0 / (fan_in + fan_out))
    return jax.random.uniform(
        key, (fan_in, fan_out), dtype=jnp.float32, minval=-bound, maxval=bound
    )


def init_params(key, state_dim):
    k1, k2 = jax.random.split(key)
    w1 = xavier_uniform(k1, state_dim, HIDDEN)          # (state_dim, 64)
    b1 = jnp.zeros((HIDDEN,), jnp.float32)
    w2 = xavier_uniform(k2, HIDDEN, 1).reshape(HIDDEN)  # (64,)
    b2 = jnp.zeros((1,), jnp.float32)
    return (w1, b1, w2, b2)


def _reference(x, params):
    w1, b1, w2, b2 = params
    h = jnp.maximum(x @ w1 + b1, 0.0)
    return jnp.squeeze(h @ w2.reshape(HIDDEN, 1) + b2)


if __name__ == "__main__":
    key = jax.random.PRNGKey(0)
    kx, kp, kx2 = jax.random.split(key, 3)

    batch = 2
    state_dim = 32

    x = jax.random.normal(kx, (batch, state_dim), dtype=jnp.float32)
    params = init_params(kp, state_dim)

    # Small-batch f32 path (single full block, all dims equal array dims).
    out = jax.block_until_ready(value_forward(x, params))
    ref = _reference(x, params)
    assert out.shape == (batch,)
    assert jnp.allclose(out, ref, atol=1e-5, rtol=1e-5)

    # Larger, non-divisible batch exercises multi-block grid + partial-block masking.
    x_big = jax.random.normal(kx2, (1000, state_dim), dtype=jnp.float32)
    out_big = jax.block_until_ready(value_forward(x_big, params, tile_b=256))
    ref_big = _reference(x_big, params)
    assert out_big.shape == (1000,)
    assert jnp.allclose(out_big, ref_big, atol=1e-5, rtol=1e-5)

    # bf16 MXU operands (x + weights pre-cast in the wrapper) with f32 accumulation.
    out_bf16 = jax.block_until_ready(
        value_forward(x_big, params, tile_b=256, compute_dtype=jnp.bfloat16)
    )
    assert jnp.allclose(out_bf16, ref_big, atol=1e-1, rtol=1e-1)

    print("KERNEL_OK")
</pallas_src>

<mosaic_0001>
module attributes {stable_mosaic.version = 11 : i64} {
  func.func @value_kernel(%arg0: i32, %arg1: memref<2x32xf32, #tpu.memory_space<vmem>>, %arg2: memref<32x64xf32, #tpu.memory_space<vmem>>, %arg3: memref<1x64xf32, #tpu.memory_space<vmem>>, %arg4: memref<1x64xf32, #tpu.memory_space<vmem>>, %arg5: memref<1x1xf32, #tpu.memory_space<vmem>>, %arg6: memref<2x1xf32, #tpu.memory_space<vmem>>) attributes {dimension_semantics = [#tpu.dimension_semantics<parallel>], iteration_bounds = array<i64: 1>, scalar_prefetch = 0 : i64, scratch_operands = 0 : i64, tpu.core_type = #tpu.core_type<tc>, window_params = [{transform_indices = @transform_0, window_bounds = array<i64: 2, 32>}, {pipeline_mode = #tpu.pipeline_mode<synchronous>, transform_indices = @transform_1, window_bounds = array<i64: 32, 64>}, {pipeline_mode = #tpu.pipeline_mode<synchronous>, transform_indices = @transform_2, window_bounds = array<i64: 1, 64>}, {pipeline_mode = #tpu.pipeline_mode<synchronous>, transform_indices = @transform_3, window_bounds = array<i64: 1, 64>}, {pipeline_mode = #tpu.pipeline_mode<synchronous>, transform_indices = @transform_4, window_bounds = array<i64: 1, 1>}, {transform_indices = @transform_5, window_bounds = array<i64: 2, 1>}]} {
    %c0 = arith.constant 0 : index
    %c0_0 = arith.constant 0 : index
    %0 = vector.load %arg1[%c0, %c0_0] : memref<2x32xf32, #tpu.memory_space<vmem>>, vector<2x32xf32>
    %c0_1 = arith.constant 0 : index
    %c0_2 = arith.constant 0 : index
    %1 = vector.load %arg2[%c0_1, %c0_2] : memref<32x64xf32, #tpu.memory_space<vmem>>, vector<32x64xf32>
    %cst = arith.constant dense<0.000000e+00> : vector<2x64xf32>
    %2 = tpu.matmul %0, %1, %cst {dimension_numbers = #tpu.dot_dimension_numbers<[1], [0], [0], [1], [0, 0, 1, 1], [], []>} : vector<2x32xf32>, vector<32x64xf32>, vector<2x64xf32> -> vector<2x64xf32>
    %c0_3 = arith.constant 0 : index
    %c0_4 = arith.constant 0 : index
    %3 = vector.load %arg3[%c0_3, %c0_4] : memref<1x64xf32, #tpu.memory_space<vmem>>, vector<1x64xf32>
    %4 = vector.broadcast %3 : vector<1x64xf32> to vector<2x64xf32>
    %5 = arith.addf %2, %4 : vector<2x64xf32>
    %cst_5 = arith.constant 0.000000e+00 : f32
    %6 = vector.broadcast %cst_5 : f32 to vector<2x64xf32>
    %7 = arith.maximumf %5, %6 : vector<2x64xf32>
    %c0_6 = arith.constant 0 : index
    %c0_7 = arith.constant 0 : index
    %8 = vector.load %arg4[%c0_6, %c0_7] : memref<1x64xf32, #tpu.memory_space<vmem>>, vector<1x64xf32>
    %9 = vector.broadcast %8 : vector<1x64xf32> to vector<2x64xf32>
    %10 = arith.mulf %7, %9 : vector<2x64xf32>
    %cst_8 = arith.constant dense<0.000000e+00> : vector<2xf32>
    %11 = vector.multi_reduction <add>, %10, %cst_8 [1] : vector<2x64xf32> to vector<2xf32>
    %12 = vector.shape_cast %11 : vector<2xf32> to vector<2x1xf32>
    %c0_9 = arith.constant 0 : index
    %c0_10 = arith.constant 0 : index
    %13 = vector.load %arg5[%c0_9, %c0_10] : memref<1x1xf32, #tpu.memory_space<vmem>>, vector<1x1xf32>
    %14 = vector.broadcast %13 : vector<1x1xf32> to vector<2x1xf32>
    %15 = arith.addf %12, %14 : vector<2x1xf32>
    %c0_11 = arith.constant 0 : index
    %c0_12 = arith.constant 0 : index
    %16 = vector.load %arg6[%c0_11, %c0_12] : memref<2x1xf32, #tpu.memory_space<vmem>>, vector<2x1xf32>
    tpu.vector_store %arg6[%c0_11, %c0_12], %15 {strides = array<i32>} : memref<2x1xf32, #tpu.memory_space<vmem>>, vector<2x1xf32>,
    return
  }
  func.func @transform_0(%arg0: i32) -> (i32, i32) {
    %c0_i32 = arith.constant 0 : i32
    %c0_i32_0 = arith.constant 0 : i32
    return %arg0, %c0_i32 : i32, i32
  }
  func.func @transform_1(%arg0: i32) -> (i32, i32) {
    %c0_i32 = arith.constant 0 : i32
    %c0_i32_0 = arith.constant 0 : i32
    %c0_i32_1 = arith.constant 0 : i32
    return %c0_i32, %c0_i32_0 : i32, i32
  }
  func.func @transform_2(%arg0: i32) -> (i32, i32) {
    %c0_i32 = arith.constant 0 : i32
    %c0_i32_0 = arith.constant 0 : i32
    %c0_i32_1 = arith.constant 0 : i32
    return %c0_i32, %c0_i32_0 : i32, i32
  }
  func.func @transform_3(%arg0: i32) -> (i32, i32) {
    %c0_i32 = arith.constant 0 : i32
    %c0_i32_0 = arith.constant 0 : i32
    %c0_i32_1 = arith.constant 0 : i32
    return %c0_i32, %c0_i32_0 : i32, i32
  }
  func.func @transform_4(%arg0: i32) -> (i32, i32) {
    %c0_i32 = arith.constant 0 : i32
    %c0_i32_0 = arith.constant 0 : i32
    %c0_i32_1 = arith.constant 0 : i32
    return %c0_i32, %c0_i32_0 : i32, i32
  }
  func.func @transform_5(%arg0: i32) -> (i32, i32) {
    %c0_i32 = arith.constant 0 : i32
    %c0_i32_0 = arith.constant 0 : i32
    return %arg0, %c0_i32 : i32, i32
  }
}

</mosaic_0001>

<bundles_post_ra>
// kernel: tpu_custom_call.1
= control target key start
LH: loop header
LB: loop body
LE: loop exit
PB: predicated region body
PF: predicated region fallthrough
CT: control target
= control target key end

     0   :  { %s269_s0 = inlined_call_operand.vmem [shape: f32[2,32], index: 0, kind: input, shape index: {}]   ;;  %s270_s1 = inlined_call_operand.hbm [shape: f32[32,64], index: 1, kind: input, shape index: {}]   ;;  %s271_s2 = inlined_call_operand.vmem [shape: f32[1,64], index: 2, kind: input, shape index: {}]   ;;  %s272_s3 = inlined_call_operand.vmem [shape: f32[1,64], index: 3, kind: input, shape index: {}]   ;;  %s273_s4 = inlined_call_operand.<no memory space> [shape: f32[1,1], index: 4, kind: input, shape index: {}]   ;;  %s274_s5 = inlined_call_operand.vmem [shape: f32[2,1], index: 5, kind: output, shape index: {}]  }
   0x1   :  { %v10_v0 = vstv %s273_s4 }
   0x2   :  { %11 = vst [vmem:[#allocation2] sm:$0x1] %v10_v0 }
   0x3   :  { %12 = vsyncpa [#allocation4], 0  ;;  %s206_s20 = smov [#allocation3]   ;;  %s182_s24 = scalar_lea.hbm %s270_s1, 512 }
   0x4   :  { %s20_s21 = sshll.u32 %s206_s20, 4  ;;  %p183_p0 = scmp.ne.s32.totalorder %s270_s1, %s182_s24  ;;  %s21_s21 = int_to_ptr.vmem [resolvable:$true] %s20_s21 }
   0x5   :  { %p186_p1 = scmp.lt.u32.totalorder %s182_s24, %s270_s1 }
   0x7   :  { %p188_p2 = pnand %p186_p1, %p183_p0 }
   0x9   :  { %191 = shalt.err (!%p188_p2)
}
   0xa   :  { %s192_s4 = scalar_lea.vmem %s21_s21, 512  ;;  %p197_p4 = scmp.lt.s32.totalorder %s21_s21, %s21_s21 }
   0xb   :  { %p193_p3 = scmp.ne.s32.totalorder %s21_s21, %s192_s4  ;;  %p198_p5 = scmp.lt.s32.totalorder %s192_s4, %s192_s4 }
   0xd   :  { %p199_p6 = por %p198_p5, %p197_p4 }
   0xf   :  { %p200_p7 = pnand %p199_p6, %p193_p3 }
  0x11   :  { %203 = shalt.err (!%p200_p7)
}
  0x12   :  { %s207_s29 = smov 128   ;;  %s208_s30 = smov 8  }
  0x13   :  { %26 = dma.hbm_to_vmem [thread:$0]  %s270_s1, 512, %s21_s21, [#allocation4], %s207_s29, %s207_s29, %s208_s30  }
  0x14   :  { %204 = dma.done.wait [#allocation4], 512  }
  0x15   :  { %205 = vsyncadd [#allocation4], 4294966784  ;;  %v209_v1 = vmov 0.0|0.0   ;;  %vm210_vm0 = vmmov 0   ;;  %v211_v2 = vmov 0.0   ;;  %v37_v3 = vld [vmem:[#allocation3] sm:$0xff] }
  0x16   :  { %170 = vmatprep.subr.bf16.mxu0 %v209_v1  ;;  %167 = vmatprep.mubr.msk.f32.mxu0 %vm210_vm0, %v211_v2  ;;  %v38_v4 = vld [vmem:[#allocation3 + $0x8] sm:$0xff]  ;;  %v39_v5 = vld [vmem:[#allocation3 + $0x10] sm:$0xff]  ;;  %v40_v7 = vld [vmem:[#allocation3 + $0x18] sm:$0xff]  ;;  %vm48_vm1 = vcmask 261120   ;;  %vm131_vm2 = vcmask 517120   ;;  %vm143_vm3 = vcmask 1024  }
  0x17   :  { %v171_v6 = vpack.c.bf16 %v38_v4, %v37_v3  ;;  %v174_v8 = vpack.c.bf16 %v40_v7, %v39_v5  ;;  %v36_v9 = vld [vmem:[%s269_s0] sm:$0x3] }
  0x18   :  { %v150_v10 = vld [vmem:[%s271_s2] ss:$0 sm:$0xff] }
  0x19   :  { %172 = vmatpush3.bf16.msra.mxu0 %v171_v6  ;;  %v152_v14 = vld [vmem:[%s272_s3] ss:$0 sm:$0xff] }
  0x1a   :  { %173 = vmatprep.subr.bf16.mxu0 %v209_v1  ;;  %v153_v18 = vld [vmem:[#allocation2] ss:$0 sm:$0xff] }
  0x1d   :  { %175 = vmatpush3.bf16.msra.mxu0 %v174_v8 }
  0x20   :  { %168 = vmatmul.mubr.msk.f32.vlgmr.msra.gmra.mrb[0].mxu0 %vm48_vm1, %v36_v9 }
  0xf3   :  { %v118_v11 = vpop.f32.mrb[0].mxu0 }
  0xf4   :  { %v119_v12 = vadd.f32 %v150_v10, %v118_v11  ;;  %v169_v13 = vpop.f32.mrb[1].mxu0 }
  0xf6   :  { %v122_v15 = vmax.f32 %v119_v12, 0.0 }
  0xf8   :  { %v130_v16 = vmul.f32 %v152_v14, %v122_v15 }
  0xfa   :  { %v132_v17 = vsel %vm131_vm2, %v130_v16, 0.0 }
  0xfb   :  { %133 = vadd.xlane.f32.xlu0 %v132_v17 }
 0x188   :  { %v134_v19 = vpop.xlane.xlu0 %133 }
 0x189   :  { %v142_v20 = vadd.f32 %v153_v18, %v134_v19 }
 0x18b   :  { %144 = vst.msk [vmem:[%s274_s5] sm:$0x3] %vm143_vm3, %v142_v20 }
 0x18c   :  { %149 = vsyncpa [#allocation4], 1 }

</bundles_post_ra>
